<compile_context>
chip_gen: v6e
topology: v6e:2x2x1
jax: 0.10.0
libtpu: 0.0.40
codegen_flags: <defaults>
</compile_context>

<pallas_src>
import functools

import jax
import jax.numpy as jnp
from jax.experimental import pallas as pl
from jax.experimental.pallas import tpu as pltpu

_H1, _H2, _H3, _OUT = 256, 128, 64, 2
_H3_PAD = 128    # pad 64-wide hidden to a full 128-lane vreg
_OUT_PAD = 128   # lane-dense final matmul; real 2 cols sliced before the store
_BN_EPS = 1e-5


def _round_up(n, m):
    return ((n + m - 1) // m) * m


def _choose_batch_tile(bp, block_b):
    """Largest tile (multiple of 128) that divides bp, fits block_b, and leaves
    >= 2 grid steps when bp >= 256 (so v7x can shard the batch across 2 TCs)."""
    k = bp // 128                      # bp is always a multiple of 128
    max_d = max(1, min(block_b // 128, k))
    if k >= 2:
        max_d = max(1, min(max_d, k // 2))
    best = 1
    for d in range(1, max_d + 1):
        if k % d == 0:
            best = d
    return 128 * best


def _mlp_kernel(x_ref,
                w1_ref, b1_ref,
                w2_ref, b2_ref,
                w3_ref, b3_ref,
                w4_ref, b4_ref,
                o_ref):
    # Layer 1: Linear (+ folded BN) + ReLU.  x cast to bf16 in-kernel (free on
    # the VPU slot), f32 accumulation on the MXU, bias/ReLU in f32.
    h = jnp.dot(x_ref[...].astype(jnp.bfloat16), w1_ref[...],
                preferred_element_type=jnp.float32)
    h = jnp.maximum(h + b1_ref[...], 0.0)

    # Layer 2
    h = jnp.dot(h.astype(jnp.bfloat16), w2_ref[...],
                preferred_element_type=jnp.float32)
    h = jnp.maximum(h + b2_ref[...], 0.0)

    # Layer 3 (cols padded 64 -> 128; padded cols are exactly 0 post-ReLU)
    h = jnp.dot(h.astype(jnp.bfloat16), w3_ref[...],
                preferred_element_type=jnp.float32)
    h = jnp.maximum(h + b3_ref[...], 0.0)

    # Output layer: lane-dense matmul (cols padded 2 -> 128, same MXU passes),
    # then store only the 2 real columns -> (TB, 2) contiguous HBM writeback.
    out = jnp.dot(h.astype(jnp.bfloat16), w4_ref[...],
                  preferred_element_type=jnp.float32)
    o_ref[...] = (out[:, :_OUT] + b4_ref[...]).astype(o_ref.dtype)


def prepare_params(params):
    """One-time preprocessing (call once, reuse for every forward):
    fold eval-mode BN into each Linear, pad narrow dims, cast weights to bf16."""
    def fold(w, b, s, t):
        return w * s, b * s + t     # (in,out)*(1,out), (1,out)

    w1, b1 = fold(params["w1"], params["b1"], params["s1"], params["t1"])
    w2, b2 = fold(params["w2"], params["b2"], params["s2"], params["t2"])
    w3, b3 = fold(params["w3"], params["b3"], params["s3"], params["t3"])
    w4, b4 = params["w4"], params["b4"]

    # Pad hidden-3 columns 64->128 (zero cols stay 0 through ReLU); pad w4's
    # input rows 64->128 to match and its output columns 2->128 for the MXU.
    # b4 stays (1, 2) — the kernel stores only the real 2 output columns.
    w3 = jnp.pad(w3, ((0, 0), (0, _H3_PAD - _H3)))
    b3 = jnp.pad(b3, ((0, 0), (0, _H3_PAD - _H3)))
    w4 = jnp.pad(w4, ((0, _H3_PAD - _H3), (0, _OUT_PAD - _OUT)))

    bf16 = lambda a: a.astype(jnp.bfloat16)
    f32 = lambda a: a.astype(jnp.float32)
    return (bf16(w1), f32(b1), bf16(w2), f32(b2),
            bf16(w3), f32(b3), bf16(w4), f32(b4))


@functools.partial(jax.jit, static_argnames=("block_b",))
def neural_net_forward(x, kernel_params, *, block_b=2048):
    """x: (B, input_dim) float32; kernel_params: output of prepare_params.
    Returns (B, 2) float32 logits."""
    B, Din = x.shape
    block_b = max(128, (int(block_b) // 128) * 128)   # enforce (8,128) rule
    Bp = _round_up(max(B, 1), 128)                    # pad batch by < 128 rows
    TB = _choose_batch_tile(Bp, block_b)

    xp = x if Bp == B else jnp.pad(x, ((0, Bp - B), (0, 0)))

    in_specs = [pl.BlockSpec((TB, Din), lambda i: (i, 0))]
    for p in kernel_params:
        # Whole-array, constant-index blocks: weights stay VMEM-resident
        # across grid steps (DMA'd once).
        in_specs.append(pl.BlockSpec(p.shape, lambda i: (0, 0)))

    # Right-size the scoped VMEM request (cap at 32 MiB: safe on v7x's 64 MiB
    # physical / 32 MiB scoped default; plenty on v5e/v6e).
    weight_bytes = sum(int(p.size) * p.dtype.itemsize for p in kernel_params)
    tile_bytes = TB * Din * 4 + TB * _OUT * 4                   # x + out tiles
    inter_bytes = TB * (_H1 + _H2 + _H3_PAD + _OUT_PAD) * 4     # f32 temporaries
    vmem_limit = 2 * weight_bytes + 2 * tile_bytes + 2 * inter_bytes + (8 << 20)
    vmem_limit = int(min(vmem_limit, 32 << 20))

    flops = 2 * Bp * (Din * _H1 + _H1 * _H2 + _H2 * _H3_PAD + _H3_PAD * _OUT_PAD)
    bytes_accessed = Bp * Din * 4 + weight_bytes + Bp * _OUT * 4

    out = pl.pallas_call(
        _mlp_kernel,
        out_shape=jax.ShapeDtypeStruct((Bp, _OUT), jnp.float32),
        grid=(Bp // TB,),
        in_specs=in_specs,
        out_specs=pl.BlockSpec((TB, _OUT), lambda i: (i, 0)),
        compiler_params=pltpu.CompilerParams(
            dimension_semantics=("parallel",),
            vmem_limit_bytes=vmem_limit,
        ),
        cost_estimate=pl.CostEstimate(
            flops=flops, bytes_accessed=bytes_accessed, transcendentals=0),
    )(xp, *kernel_params)

    return out if Bp == B else out[:B]


def init_params(key, input_dim):
    """Deterministic synthetic parameters matching the PyTorch module shapes."""
    dims = [input_dim, _H1, _H2, _H3, _OUT]
    keys = jax.random.split(key, 8)
    params = {}
    for li in range(4):
        fan_in, fan_out = dims[li], dims[li + 1]
        kw, kb = keys[2 * li], keys[2 * li + 1]
        bound = 1.0 / jnp.sqrt(fan_in)
        # stored as (in, out) so the kernel does x @ W
        params[f"w{li + 1}"] = jax.random.uniform(
            kw, (fan_in, fan_out), jnp.float32, -bound, bound)
        params[f"b{li + 1}"] = jax.random.uniform(
            kb, (1, fan_out), jnp.float32, -bound, bound)
        if li < 3:
            # BatchNorm1d eval-mode params of a fresh module:
            # gamma=1, beta=0, running_mean=0, running_var=1
            gamma = jnp.ones((1, fan_out), jnp.float32)
            beta = jnp.zeros((1, fan_out), jnp.float32)
            running_mean = jnp.zeros((1, fan_out), jnp.float32)
            running_var = jnp.ones((1, fan_out), jnp.float32)
            scale = gamma / jnp.sqrt(running_var + _BN_EPS)
            shift = beta - running_mean * scale
            params[f"s{li + 1}"] = scale
            params[f"t{li + 1}"] = shift
    return params


def _reference_forward(x, params):
    """Pure-JAX f32 reference (unfolded BN, eval-mode dropout=identity)."""
    h = x
    for li in range(3):
        h = h @ params[f"w{li + 1}"] + params[f"b{li + 1}"]
        h = h * params[f"s{li + 1}"] + params[f"t{li + 1}"]
        h = jnp.maximum(h, 0.0)
    return h @ params["w4"] + params["b4"]


if __name__ == "__main__":
    key = jax.random.PRNGKey(0)
    k_x, k_p = jax.random.split(key)

    B, input_dim = 8, 32
    x = jax.random.normal(k_x, (B, input_dim), jnp.float32)
    params = init_params(k_p, input_dim)

    # One-time preprocessing (BN fold + pad + bf16 cast), reused across calls.
    kernel_params = prepare_params(params)
    kernel_params = jax.block_until_ready(kernel_params)

    out = neural_net_forward(x, kernel_params)
    out = jax.block_until_ready(out)

    ref = _reference_forward(x, params)
    assert out.shape == (B, 2), out.shape
    # bf16 matmul operands (f32 accumulation) -> loose tolerance vs f32 reference
    assert jnp.allclose(out, ref, atol=5e-2, rtol=5e-2), "mismatch vs reference"

    print("KERNEL_OK")
</pallas_src>

<mosaic_0001>
module attributes {stable_mosaic.version = 11 : i64} {
  func.func @_mlp_kernel(%arg0: i32, %arg1: memref<128x32xf32, #tpu.memory_space<vmem>>, %arg2: memref<32x256xbf16, #tpu.memory_space<vmem>>, %arg3: memref<1x256xf32, #tpu.memory_space<vmem>>, %arg4: memref<256x128xbf16, #tpu.memory_space<vmem>>, %arg5: memref<1x128xf32, #tpu.memory_space<vmem>>, %arg6: memref<128x128xbf16, #tpu.memory_space<vmem>>, %arg7: memref<1x128xf32, #tpu.memory_space<vmem>>, %arg8: memref<128x128xbf16, #tpu.memory_space<vmem>>, %arg9: memref<1x2xf32, #tpu.memory_space<vmem>>, %arg10: memref<128x2xf32, #tpu.memory_space<vmem>>) attributes {dimension_semantics = [#tpu.dimension_semantics<parallel>], iteration_bounds = array<i64: 1>, scalar_prefetch = 0 : i64, scratch_operands = 0 : i64, tpu.core_type = #tpu.core_type<tc>, window_params = [{transform_indices = @transform_0, window_bounds = array<i64: 128, 32>}, {pipeline_mode = #tpu.pipeline_mode<synchronous>, transform_indices = @transform_1, window_bounds = array<i64: 32, 256>}, {pipeline_mode = #tpu.pipeline_mode<synchronous>, transform_indices = @transform_2, window_bounds = array<i64: 1, 256>}, {pipeline_mode = #tpu.pipeline_mode<synchronous>, transform_indices = @transform_3, window_bounds = array<i64: 256, 128>}, {pipeline_mode = #tpu.pipeline_mode<synchronous>, transform_indices = @transform_4, window_bounds = array<i64: 1, 128>}, {pipeline_mode = #tpu.pipeline_mode<synchronous>, transform_indices = @transform_5, window_bounds = array<i64: 128, 128>}, {pipeline_mode = #tpu.pipeline_mode<synchronous>, transform_indices = @transform_6, window_bounds = array<i64: 1, 128>}, {pipeline_mode = #tpu.pipeline_mode<synchronous>, transform_indices = @transform_7, window_bounds = array<i64: 128, 128>}, {pipeline_mode = #tpu.pipeline_mode<synchronous>, transform_indices = @transform_8, window_bounds = array<i64: 1, 2>}, {transform_indices = @transform_9, window_bounds = array<i64: 128, 2>}]} {
    %c0 = arith.constant 0 : index
    %c0_0 = arith.constant 0 : index
    %0 = vector.load %arg1[%c0, %c0_0] : memref<128x32xf32, #tpu.memory_space<vmem>>, vector<128x32xf32>
    %1 = arith.truncf %0 : vector<128x32xf32> to vector<128x32xbf16>
    %c0_1 = arith.constant 0 : index
    %c0_2 = arith.constant 0 : index
    %2 = vector.load %arg2[%c0_1, %c0_2] : memref<32x256xbf16, #tpu.memory_space<vmem>>, vector<32x256xbf16>
    %cst = arith.constant dense<0.000000e+00> : vector<128x256xf32>
    %3 = tpu.matmul %1, %2, %cst {dimension_numbers = #tpu.dot_dimension_numbers<[1], [0], [0], [1], [0, 0, 1, 1], [], []>} : vector<128x32xbf16>, vector<32x256xbf16>, vector<128x256xf32> -> vector<128x256xf32>
    %c0_3 = arith.constant 0 : index
    %c0_4 = arith.constant 0 : index
    %4 = vector.load %arg3[%c0_3, %c0_4] : memref<1x256xf32, #tpu.memory_space<vmem>>, vector<1x256xf32>
    %5 = vector.broadcast %4 : vector<1x256xf32> to vector<128x256xf32>
    %6 = arith.addf %3, %5 : vector<128x256xf32>
    %cst_5 = arith.constant 0.000000e+00 : f32
    %7 = vector.broadcast %cst_5 : f32 to vector<128x256xf32>
    %8 = arith.maximumf %6, %7 : vector<128x256xf32>
    %9 = arith.truncf %8 : vector<128x256xf32> to vector<128x256xbf16>
    %c0_6 = arith.constant 0 : index
    %c0_7 = arith.constant 0 : index
    %10 = vector.load %arg4[%c0_6, %c0_7] : memref<256x128xbf16, #tpu.memory_space<vmem>>, vector<256x128xbf16>
    %cst_8 = arith.constant dense<0.000000e+00> : vector<128x128xf32>
    %11 = tpu.matmul %9, %10, %cst_8 {dimension_numbers = #tpu.dot_dimension_numbers<[1], [0], [0], [1], [0, 0, 1, 1], [], []>} : vector<128x256xbf16>, vector<256x128xbf16>, vector<128x128xf32> -> vector<128x128xf32>
    %c0_9 = arith.constant 0 : index
    %c0_10 = arith.constant 0 : index
    %12 = vector.load %arg5[%c0_9, %c0_10] : memref<1x128xf32, #tpu.memory_space<vmem>>, vector<1x128xf32>
    %13 = vector.broadcast %12 : vector<1x128xf32> to vector<128x128xf32>
    %14 = arith.addf %11, %13 : vector<128x128xf32>
    %cst_11 = arith.constant 0.000000e+00 : f32
    %15 = vector.broadcast %cst_11 : f32 to vector<128x128xf32>
    %16 = arith.maximumf %14, %15 : vector<128x128xf32>
    %17 = arith.truncf %16 : vector<128x128xf32> to vector<128x128xbf16>
    %c0_12 = arith.constant 0 : index
    %c0_13 = arith.constant 0 : index
    %18 = vector.load %arg6[%c0_12, %c0_13] : memref<128x128xbf16, #tpu.memory_space<vmem>>, vector<128x128xbf16>
    %cst_14 = arith.constant dense<0.000000e+00> : vector<128x128xf32>
    %19 = tpu.matmul %17, %18, %cst_14 {dimension_numbers = #tpu.dot_dimension_numbers<[1], [0], [0], [1], [0, 0, 1, 1], [], []>} : vector<128x128xbf16>, vector<128x128xbf16>, vector<128x128xf32> -> vector<128x128xf32>
    %c0_15 = arith.constant 0 : index
    %c0_16 = arith.constant 0 : index
    %20 = vector.load %arg7[%c0_15, %c0_16] : memref<1x128xf32, #tpu.memory_space<vmem>>, vector<1x128xf32>
    %21 = vector.broadcast %20 : vector<1x128xf32> to vector<128x128xf32>
    %22 = arith.addf %19, %21 : vector<128x128xf32>
    %cst_17 = arith.constant 0.000000e+00 : f32
    %23 = vector.broadcast %cst_17 : f32 to vector<128x128xf32>
    %24 = arith.maximumf %22, %23 : vector<128x128xf32>
    %25 = arith.truncf %24 : vector<128x128xf32> to vector<128x128xbf16>
    %c0_18 = arith.constant 0 : index
    %c0_19 = arith.constant 0 : index
    %26 = vector.load %arg8[%c0_18, %c0_19] : memref<128x128xbf16, #tpu.memory_space<vmem>>, vector<128x128xbf16>
    %cst_20 = arith.constant dense<0.000000e+00> : vector<128x128xf32>
    %27 = tpu.matmul %25, %26, %cst_20 {dimension_numbers = #tpu.dot_dimension_numbers<[1], [0], [0], [1], [0, 0, 1, 1], [], []>} : vector<128x128xbf16>, vector<128x128xbf16>, vector<128x128xf32> -> vector<128x128xf32>
    %28 = vector.extract_strided_slice %27 {offsets = [0, 0], sizes = [128, 2], strides = [1, 1]} : vector<128x128xf32> to vector<128x2xf32>
    %c0_21 = arith.constant 0 : index
    %c0_22 = arith.constant 0 : index
    %29 = vector.load %arg9[%c0_21, %c0_22] : memref<1x2xf32, #tpu.memory_space<vmem>>, vector<1x2xf32>
    %30 = vector.broadcast %29 : vector<1x2xf32> to vector<128x2xf32>
    %31 = arith.addf %28, %30 : vector<128x2xf32>
    %c0_23 = arith.constant 0 : index
    %c0_24 = arith.constant 0 : index
    %32 = vector.load %arg10[%c0_23, %c0_24] : memref<128x2xf32, #tpu.memory_space<vmem>>, vector<128x2xf32>
    tpu.vector_store %arg10[%c0_23, %c0_24], %31 {strides = array<i32>} : memref<128x2xf32, #tpu.memory_space<vmem>>, vector<128x2xf32>,
    return
  }
  func.func @transform_0(%arg0: i32) -> (i32, i32) {
    %c0_i32 = arith.constant 0 : i32
    %c0_i32_0 = arith.constant 0 : i32
    return %arg0, %c0_i32 : i32, i32
  }
  func.func @transform_1(%arg0: i32) -> (i32, i32) {
    %c0_i32 = arith.constant 0 : i32
    %c0_i32_0 = arith.constant 0 : i32
    %c0_i32_1 = arith.constant 0 : i32
    return %c0_i32, %c0_i32_0 : i32, i32
  }
  func.func @transform_2(%arg0: i32) -> (i32, i32) {
    %c0_i32 = arith.constant 0 : i32
    %c0_i32_0 = arith.constant 0 : i32
    %c0_i32_1 = arith.constant 0 : i32
    return %c0_i32, %c0_i32_0 : i32, i32
  }
  func.func @transform_3(%arg0: i32) -> (i32, i32) {
    %c0_i32 = arith.constant 0 : i32
    %c0_i32_0 = arith.constant 0 : i32
    %c0_i32_1 = arith.constant 0 : i32
    return %c0_i32, %c0_i32_0 : i32, i32
  }
  func.func @transform_4(%arg0: i32) -> (i32, i32) {
    %c0_i32 = arith.constant 0 : i32
    %c0_i32_0 = arith.constant 0 : i32
    %c0_i32_1 = arith.constant 0 : i32
    return %c0_i32, %c0_i32_0 : i32, i32
  }
  func.func @transform_5(%arg0: i32) -> (i32, i32) {
    %c0_i32 = arith.constant 0 : i32
    %c0_i32_0 = arith.constant 0 : i32
    %c0_i32_1 = arith.constant 0 : i32
    return %c0_i32, %c0_i32_0 : i32, i32
  }
  func.func @transform_6(%arg0: i32) -> (i32, i32) {
    %c0_i32 = arith.constant 0 : i32
    %c0_i32_0 = arith.constant 0 : i32
    %c0_i32_1 = arith.constant 0 : i32
    return %c0_i32, %c0_i32_0 : i32, i32
  }
  func.func @transform_7(%arg0: i32) -> (i32, i32) {
    %c0_i32 = arith.constant 0 : i32
    %c0_i32_0 = arith.constant 0 : i32
    %c0_i32_1 = arith.constant 0 : i32
    return %c0_i32, %c0_i32_0 : i32, i32
  }
  func.func @transform_8(%arg0: i32) -> (i32, i32) {
    %c0_i32 = arith.constant 0 : i32
    %c0_i32_0 = arith.constant 0 : i32
    %c0_i32_1 = arith.constant 0 : i32
    return %c0_i32, %c0_i32_0 : i32, i32
  }
  func.func @transform_9(%arg0: i32) -> (i32, i32) {
    %c0_i32 = arith.constant 0 : i32
    %c0_i32_0 = arith.constant 0 : i32
    return %arg0, %c0_i32 : i32, i32
  }
}

</mosaic_0001>

<bundles_post_ra>
// kernel: neural_net_forward.1
= control target key start
LH: loop header
LB: loop body
LE: loop exit
PB: predicated region body
PF: predicated region fallthrough
CT: control target
= control target key end

     0   :  { %14 = vsyncpa [#allocation3], 0  ;;  %s1629_s0 = inlined_call_operand.vmem [shape: f32[128,32], index: 0, kind: input, shape index: {}]   ;;  %s1630_s1 = inlined_call_operand.hbm [shape: bf16[32,256], index: 1, kind: input, shape index: {}]   ;;  %s1631_s2 = inlined_call_operand.vmem [shape: f32[1,256], index: 2, kind: input, shape index: {}]   ;;  %s1632_s3 = inlined_call_operand.vmem [shape: bf16[256,128], index: 3, kind: input, shape index: {}]   ;;  %s1633_s4 = inlined_call_operand.vmem [shape: f32[1,128], index: 4, kind: input, shape index: {}]   ;;  %s1634_s5 = inlined_call_operand.hbm [shape: bf16[128,128], index: 5, kind: input, shape index: {}]   ;;  %s1635_s6 = inlined_call_operand.vmem [shape: f32[1,128], index: 6, kind: input, shape index: {}]   ;;  %s1636_s7 = inlined_call_operand.hbm [shape: bf16[128,128], index: 7, kind: input, shape index: {}]   ;;  %s1637_s8 = inlined_call_operand.vmem [shape: f32[1,2], index: 8, kind: input, shape index: {}]   ;;  %s1638_s9 = inlined_call_operand.vmem [shape: f32[128,2], index: 9, kind: output, shape index: {}]  }
   0x1   :  { %15 = vsyncpa [#allocation5], 0  ;;  %s1308_s30 = smov [#allocation4]  }
   0x2   :  { %s41_s10 = sshll.u32 %s1308_s30, 4  ;;  %s42_s10 = int_to_ptr.vmem [resolvable:$true] %s41_s10 }
   0x3   :  { %s1252_s11 = scalar_lea.vmem %s42_s10, 1024  ;;  %p1257_p1 = scmp.lt.s32.totalorder %s42_s10, %s42_s10 }
   0x4   :  { %p1253_p0 = scmp.ne.s32.totalorder %s42_s10, %s1252_s11  ;;  %p1258_p2 = scmp.lt.s32.totalorder %s1252_s11, %s1252_s11 }
   0x6   :  { %p1259_p3 = por %p1258_p2, %p1257_p1 }
   0x8   :  { %p1260_p4 = pnand %p1259_p3, %p1253_p0 }
   0xa   :  { %1263 = shalt.err (!%p1260_p4)
}
   0xb   :  { %s1309_s12 = smov 64   ;;  %s1310_s13 = smov 4  }
   0xc   :  { %47 = dma.hbm_to_vmem [thread:$0]  %s1634_s5, 1024, %s42_s10, [#allocation5], %s1309_s12, %s1309_s12, %s1310_s13  }
   0xd   :  { %s1311_s16 = smov [#allocation2]  }
   0xe   :  { %s23_s17 = sshll.u32 %s1311_s16, 4  ;;  %s24_s17 = int_to_ptr.vmem [resolvable:$true] %s23_s17 }
   0xf   :  { %s1272_s18 = scalar_lea.vmem %s24_s17, 512  ;;  %p1277_p6 = scmp.lt.s32.totalorder %s24_s17, %s24_s17 }
  0x10   :  { %p1273_p5 = scmp.ne.s32.totalorder %s24_s17, %s1272_s18  ;;  %p1278_p7 = scmp.lt.s32.totalorder %s1272_s18, %s1272_s18 }
  0x12   :  { %p1279_p8 = por %p1278_p7, %p1277_p6 }
  0x14   :  { %p1280_p9 = pnand %p1279_p8, %p1273_p5 }
  0x16   :  { %1283 = shalt.err (!%p1280_p9)
}
  0x17   :  { %s1312_s19 = smov 128   ;;  %s1313_s20 = smov 8  }
  0x18   :  { %29 = dma.hbm_to_vmem [thread:$0]  %s1630_s1, 512, %s24_s17, [#allocation3], %s1312_s19, %s1312_s19, %s1313_s20  }
  0x19   :  { %s1314_s23 = smov [#allocation6]  }
  0x1a   :  { %s55_s24 = sshll.u32 %s1314_s23, 4  ;;  %s56_s24 = int_to_ptr.vmem [resolvable:$true] %s55_s24 }
  0x1b   :  { %s1292_s5 = scalar_lea.vmem %s56_s24, 1024  ;;  %p1297_p11 = scmp.lt.s32.totalorder %s56_s24, %s56_s24 }
  0x1c   :  { %p1293_p10 = scmp.ne.s32.totalorder %s56_s24, %s1292_s5  ;;  %p1298_p12 = scmp.lt.s32.totalorder %s1292_s5, %s1292_s5 }
  0x1e   :  { %p1299_p13 = por %p1298_p12, %p1297_p11 }
  0x20   :  { %p1300_p0 = pnand %p1299_p13, %p1293_p10 }
  0x22   :  { %1303 = shalt.err (!%p1300_p0)
}
  0x23   :  { %61 = dma.hbm_to_vmem [thread:$0]  %s1636_s7, 1024, %s56_s24, [#allocation5], %s1309_s12, %s1309_s12, %s1310_s13  }
  0x24   :  { %1304 = dma.done.wait [#allocation3], 512  }
  0x25   :  { %1305 = vsyncadd [#allocation3], 4294966784 }
  0x26   :  { %1306 = dma.done.wait [#allocation5], 2048  }
  0x27   :  { %1307 = vsyncadd [#allocation5], 4294965248  ;;  %v1315_v0 = vmov 0   ;;  %v1206_v1 = vld [vmem:[#allocation2 + $0x14] ss:$8 sps:$4 sm:$0xff]   ;;  %v74_v5 = vld [vmem:[%s1629_s0] sm:$0xff]  ;;  %v104_v48 = vlaneseq }
  0x28   :  { %191 = vmatprep.mubr.bf16.mxu0 %v1315_v0  ;;  %v1208_v2 = vld [vmem:[#allocation2 + $0x10] ss:$8 sps:$4 sm:$0xff]   ;;  %171 = vmatprep.subr.bf16.mxu0 %v1206_v1  ;;  %v1209_v3 = vld [vmem:[#allocation2 + $0x4] ss:$8 sps:$4 sm:$0xff]   ;;  %v1211_v4 = vld [vmem:[#allocation2] ss:$8 sps:$4 sm:$0xff]  }
  0x29   :  { %172 = vmatpush1.bf16.msra.mxu0 %v1208_v2  ;;  %v75_v6 = vld [vmem:[%s1629_s0 + $0x8] sm:$0xff]  ;;  %vm134_vm0 = vcmask 261120   ;;  %v1212_v8 = vld [vmem:[%s1632_s3 + $0x78] sm:$0xff]   ;;  %v76_v9 = vld [vmem:[%s1629_s0 + $0x10] sm:$0xff]  ;;  %v105_v49 = vshrl.u32 %v104_v48, 7  ;;  %vm952_vm1 = vcmask 15360  }
  0x2a   :  { %173 = vmatprep.subr.bf16.mxu0 %v1209_v3  ;;  %v90_v7 = vpack.c.bf16 %v75_v6, %v74_v5  ;;  %v77_v10 = vld [vmem:[%s1629_s0 + $0x18] sm:$0xff]  ;;  %1022 = vmatprep.subr.bf16.mxu1 %v1212_v8  ;;  %v1214_v12 = vld [vmem:[%s1632_s3 + $0x70] sm:$0xff]   ;;  %v1216_v14 = vld [vmem:[%s1632_s3 + $0x68] sm:$0xff]  }
  0x2b   :  { %v1213_v11 = vld [vmem:[%s1632_s3 + $0x38] sm:$0xff]   ;;  %v1215_v13 = vld [vmem:[%s1632_s3 + $0x30] sm:$0xff]   ;;  %v91_v15 = vpack.c.bf16 %v77_v10, %v76_v9  ;;  %v1217_v16 = vld [vmem:[%s1632_s3 + $0x28] sm:$0xff]   ;;  %v110_v50 = vsub.s32 1, %v105_v49  ;;  %v106_v51 = vsub.s32 0, %v105_v49 }
  0x2c   :  { %1023 = vmatpush3.bf16.msra.mxu1 %v1213_v11  ;;  %v1218_v17 = vld [vmem:[%s1632_s3 + $0x60] sm:$0xff]   ;;  %v79_v19 = vld [vmem:[%s1629_s0 + $0x28] sm:$0xff]  ;;  %v1220_v21 = vld [vmem:[%s1632_s3 + $0x58] sm:$0xff]  }
  0x2d   :  { %174 = vmatpush1.bf16.msra.mxu0 %v1211_v4  ;;  %1024 = vmatprep.subr.bf16.mxu1 %v1214_v12  ;;  %v78_v18 = vld [vmem:[%s1629_s0 + $0x20] sm:$0xff]  ;;  %v1221_v22 = vld [vmem:[%s1632_s3 + $0x18] sm:$0xff]   ;;  %v80_v24 = vld [vmem:[%s1629_s0 + $0x30] sm:$0xff] }
  0x2e   :  { %v1219_v20 = vld [vmem:[%s1632_s3 + $0x20] sm:$0xff]   ;;  %v92_v23 = vpack.c.bf16 %v79_v19, %v78_v18  ;;  %v81_v25 = vld [vmem:[%s1629_s0 + $0x38] sm:$0xff]  ;;  %v83_v28 = vld [vmem:[%s1629_s0 + $0x48] sm:$0xff] }
  0x2f   :  { %v93_v26 = vpack.c.bf16 %v81_v25, %v80_v24  ;;  %v82_v27 = vld [vmem:[%s1629_s0 + $0x40] sm:$0xff]  ;;  %v84_v30 = vld [vmem:[%s1629_s0 + $0x50] sm:$0xff]  ;;  %v85_v31 = vld [vmem:[%s1629_s0 + $0x58] sm:$0xff] }
  0x30   :  { %979 = vmatmul.mubr.msk.bf16.vlgmr.msra.gmra.mxu0 %vm134_vm0, %v90_v7  ;;  %1025 = vmatpush3.bf16.msra.mxu1 %v1215_v13  ;;  %v94_v29 = vpack.c.bf16 %v83_v28, %v82_v27  ;;  %v95_v32 = vpack.c.bf16 %v85_v31, %v84_v30  ;;  %v86_v33 = vld [vmem:[%s1629_s0 + $0x60] sm:$0xff]  ;;  %v87_v34 = vld [vmem:[%s1629_s0 + $0x68] sm:$0xff]  ;;  %v88_v36 = vld [vmem:[%s1629_s0 + $0x70] sm:$0xff] }
  0x31   :  { %201 = vmatprep.mubr.bf16.mxu0 %v1315_v0  ;;  %1026 = vmatprep.subr.bf16.mxu1 %v1216_v14  ;;  %v96_v35 = vpack.c.bf16 %v87_v34, %v86_v33  ;;  %v89_v37 = vld [vmem:[%s1629_s0 + $0x78] sm:$0xff]  ;;  %v1222_v39 = vld [vmem:[%s1632_s3 + $0x50] sm:$0xff]   ;;  %v1224_v41 = vld [vmem:[%s1632_s3 + $0x48] sm:$0xff]  }
  0x32   :  { %v97_v38 = vpack.c.bf16 %v89_v37, %v88_v36  ;;  %v1223_v40 = vld [vmem:[%s1632_s3 + $0x10] sm:$0xff]   ;;  %v1225_v42 = vld [vmem:[%s1632_s3 + $0x8] sm:$0xff]   ;;  %v1226_v43 = vld [vmem:[%s1632_s3 + $0x40] sm:$0xff]  }
  0x33   :  { %v1227_v44 = vld [vmem:[%s1632_s3] sm:$0xff]   ;;  %v1228_v45 = vld [vmem:[#allocation4 + $0x38] sm:$0xff]   ;;  %v1229_v46 = vld [vmem:[#allocation4 + $0x30] sm:$0xff]  }
  0x34   :  { %1027 = vmatpush3.bf16.msra.mxu1 %v1217_v16  ;;  %1118 = vmatprep.subr.bf16.mxu0 %v1228_v45  ;;  %v1230_v47 = vld [vmem:[#allocation4 + $0x28] sm:$0xff]   ;;  %v102_v52 = vld [vmem:[%s1631_s2] sm:$0x3] }
  0x35   :  { %1028 = vmatprep.subr.bf16.mxu1 %v1218_v17  ;;  %1119 = vmatpush3.bf16.msra.mxu0 %v1228_v45  ;;  %v1490_v54 = vrot.slane %v102_v52, %v110_v50  ;;  %v1492_v55 = vrot.slane %v102_v52, %v106_v51 }
  0x36   :  { %1120 = vmatprep.subr.bf16.mxu0 %v1229_v46 }
  0x38   :  { %980 = vmatmul.mubr.msk.bf16.gmra.mxu0 %vm134_vm0, %v91_v15  ;;  %1029 = vmatpush3.bf16.msra.mxu1 %v1219_v20 }
  0x39   :  { %211 = vmatprep.mubr.bf16.mxu0 %v1315_v0  ;;  %1030 = vmatprep.subr.bf16.mxu1 %v1220_v21 }
  0x3a   :  { %1121 = vmatpush3.bf16.msra.mxu0 %v1229_v46 }
  0x3b   :  { %1122 = vmatprep.subr.bf16.mxu0 %v1230_v47 }
  0x3c   :  { %1031 = vmatpush3.bf16.msra.mxu1 %v1221_v22 }
  0x3d   :  { %1032 = vmatprep.subr.bf16.mxu1 %v1222_v39 }
  0x3e   :  { %1123 = vmatpush3.bf16.msra.mxu0 %v1230_v47 }
  0x40   :  { %981 = vmatmul.mubr.msk.bf16.gmra.mxu0 %vm134_vm0, %v92_v23  ;;  %1033 = vmatpush3.bf16.msra.mxu1 %v1223_v40 }
  0x41   :  { %221 = vmatprep.mubr.bf16.mxu0 %v1315_v0  ;;  %1034 = vmatprep.subr.bf16.mxu1 %v1224_v41 }
  0x44   :  { %1035 = vmatpush3.bf16.msra.mxu1 %v1225_v42 }
  0x45   :  { %1036 = vmatprep.subr.bf16.mxu1 %v1226_v43 }
  0x48   :  { %982 = vmatmul.mubr.msk.bf16.gmra.mxu0 %vm134_vm0, %v93_v26  ;;  %1037 = vmatpush3.bf16.msra.mxu1 %v1227_v44 }
  0x49   :  { %231 = vmatprep.mubr.bf16.mxu0 %v1315_v0 }
  0x50   :  { %983 = vmatmul.mubr.msk.bf16.gmra.mxu0 %vm134_vm0, %v94_v29 }
  0x51   :  { %241 = vmatprep.mubr.bf16.mxu0 %v1315_v0 }
  0x58   :  { %984 = vmatmul.mubr.msk.bf16.gmra.mxu0 %vm134_vm0, %v95_v32 }
  0x59   :  { %251 = vmatprep.mubr.bf16.mxu0 %v1315_v0 }
  0x60   :  { %985 = vmatmul.mubr.msk.bf16.gmra.mxu0 %vm134_vm0, %v96_v35 }
  0x61   :  { %261 = vmatprep.mubr.bf16.mxu0 %v1315_v0 }
  0x68   :  { %986 = vmatmul.mubr.msk.bf16.gmra.mxu0 %vm134_vm0, %v97_v38 }
  0xf0   :  { %v193_v53 = vpop.f32.mrf.mxu0 }
  0xf1   :  { %v194_v60 = vadd.f32 %v193_v53, %v1492_v55 }
  0xf2   :  { %v195_v56 = vpop.f32.mrf.mxu0 }
  0xf3   :  { %v196_v58 = vadd.f32 %v195_v56, %v1490_v54  ;;  %v272_v3 = vmax.f32 %v194_v60, 0.0 }
  0xf4   :  { %v197_v57 = vpop.f32.mrf.mxu0 }
  0xf5   :  { %v198_v59 = vadd.f32 %v197_v57, %v1492_v55  ;;  %v273_v1 = vmax.f32 %v196_v58, 0.0 }
  0xf6   :  { %v199_v61 = vpop.f32.mrf.mxu0 }
  0xf7   :  { %v200_v62 = vadd.f32 %v199_v61, %v1490_v54  ;;  %v274_v63 = vmax.f32 %v198_v59, 0.0 }
  0xf8   :  { %v203_v0 = vpop.f32.mrf.mxu0 }
  0xf9   :  { %v275_v2 = vmax.f32 %v200_v62, 0.0  ;;  %v304_v6 = vpack.c.bf16 %v274_v63, %v272_v3  ;;  %v204_v10 = vadd.f32 %v203_v0, %v1492_v55 }
  0xfa   :  { %v205_v4 = vpop.f32.mrf.mxu0 }
  0xfb   :  { %v305_v5 = vpack.c.bf16 %v275_v2, %v273_v1  ;;  %v206_v8 = vadd.f32 %v205_v4, %v1490_v54  ;;  %v276_v17 = vmax.f32 %v204_v10, 0.0 }
  0xfc   :  { %v207_v7 = vpop.f32.mrf.mxu0 }
  0xfd   :  { %v208_v9 = vadd.f32 %v207_v7, %v1492_v55  ;;  %487 = vmatprep.mubr.bf16.mxu1 %v305_v5  ;;  %v277_v15 = vmax.f32 %v206_v8, 0.0 }
  0xfe   :  { %v209_v11 = vpop.f32.mrf.mxu0  ;;  %488 = vmatmul.mubr.bf16.vlgmr.msra.gmra.mxu1 %v304_v6 }
  0xff   :  { %v210_v12 = vadd.f32 %v209_v11, %v1490_v54  ;;  %v278_v13 = vmax.f32 %v208_v9, 0.0 }
 0x100   :  { %v213_v14 = vpop.f32.mrf.mxu0 }
 0x101   :  { %v279_v16 = vmax.f32 %v210_v12, 0.0  ;;  %v306_v20 = vpack.c.bf16 %v278_v13, %v276_v17  ;;  %v214_v24 = vadd.f32 %v213_v14, %v1492_v55 }
 0x102   :  { %v215_v18 = vpop.f32.mrf.mxu0 }
 0x103   :  { %v307_v19 = vpack.c.bf16 %v279_v16, %v277_v15  ;;  %v216_v22 = vadd.f32 %v215_v18, %v1490_v54  ;;  %v280_v31 = vmax.f32 %v214_v24, 0.0 }
 0x104   :  { %v217_v21 = vpop.f32.mrf.mxu0 }
 0x105   :  { %v218_v23 = vadd.f32 %v217_v21, %v1492_v55  ;;  %495 = vmatprep.mubr.bf16.mxu1 %v307_v19  ;;  %v281_v29 = vmax.f32 %v216_v22, 0.0 }
 0x106   :  { %v219_v25 = vpop.f32.mrf.mxu0  ;;  %496 = vmatmul.mubr.bf16.gmra.mxu1 %v306_v20 }
 0x107   :  { %v220_v26 = vadd.f32 %v219_v25, %v1490_v54  ;;  %v282_v27 = vmax.f32 %v218_v23, 0.0 }
 0x108   :  { %v223_v28 = vpop.f32.mrf.mxu0 }
 0x109   :  { %v283_v30 = vmax.f32 %v220_v26, 0.0  ;;  %v308_v34 = vpack.c.bf16 %v282_v27, %v280_v31  ;;  %v224_v38 = vadd.f32 %v223_v28, %v1492_v55 }
 0x10a   :  { %v225_v32 = vpop.f32.mrf.mxu0 }
 0x10b   :  { %v309_v33 = vpack.c.bf16 %v283_v30, %v281_v29  ;;  %v226_v36 = vadd.f32 %v225_v32, %v1490_v54  ;;  %v284_v45 = vmax.f32 %v224_v38, 0.0 }
 0x10c   :  { %v227_v35 = vpop.f32.mrf.mxu0 }
 0x10d   :  { %v228_v37 = vadd.f32 %v227_v35, %v1492_v55  ;;  %503 = vmatprep.mubr.bf16.mxu1 %v309_v33  ;;  %v285_v43 = vmax.f32 %v226_v36, 0.0 }
 0x10e   :  { %v229_v39 = vpop.f32.mrf.mxu0  ;;  %504 = vmatmul.mubr.bf16.gmra.mxu1 %v308_v34 }
 0x10f   :  { %v230_v40 = vadd.f32 %v229_v39, %v1490_v54  ;;  %v286_v41 = vmax.f32 %v228_v37, 0.0 }
 0x110   :  { %v233_v42 = vpop.f32.mrf.mxu0 }
 0x111   :  { %v287_v44 = vmax.f32 %v230_v40, 0.0  ;;  %v310_v48 = vpack.c.bf16 %v286_v41, %v284_v45  ;;  %v234_v52 = vadd.f32 %v233_v42, %v1492_v55  ;;  %v1231_v41 = vld [vmem:[#allocation4 + $0x20] sm:$0xff]   ;;  %v1232_v42 = vld [vmem:[#allocation4 + $0x18] sm:$0xff]   ;;  %v1237_v45 = vld [vmem:[#allocation6 + $0x30] sm:$0xff]  }
 0x112   :  { %v235_v46 = vpop.f32.mrf.mxu0  ;;  %1124 = vmatprep.subr.bf16.mxu0 %v1231_v41 }
 0x113   :  { %v311_v47 = vpack.c.bf16 %v287_v44, %v285_v43  ;;  %v236_v50 = vadd.f32 %v235_v46, %v1490_v54  ;;  %v288_v61 = vmax.f32 %v234_v52, 0.0  ;;  %1125 = vmatpush3.bf16.msra.mxu0 %v1231_v41  ;;  %v1233_v43 = vld [vmem:[#allocation4 + $0x10] sm:$0xff]   ;;  %v1236_v44 = vld [vmem:[#allocation6 + $0x38] sm:$0xff]   ;;  %v1238_v46 = vld [vmem:[#allocation6 + $0x28] sm:$0xff]  }
 0x114   :  { %v237_v49 = vpop.f32.mrf.mxu0  ;;  %1126 = vmatprep.subr.bf16.mxu0 %v1232_v42  ;;  %1182 = vmatprep.subr.bf16.mxu1 %v1236_v44  ;;  %v1537_v52 = vld [vmem:[%s1633_s4] ss:$0 sm:$0xff] }
 0x115   :  { %v238_v51 = vadd.f32 %v237_v49, %v1492_v55  ;;  %511 = vmatprep.mubr.bf16.mxu1 %v311_v47  ;;  %v289_v59 = vmax.f32 %v236_v50, 0.0  ;;  %1190 = vmatpush3.bf16.msra.mxu1 %v1236_v44  ;;  %v1526_v47 = vld [vmem:[#allocation6 + $0x20] sm:$0xff]  }
 0x116   :  { %v239_v53 = vpop.f32.mrf.mxu0  ;;  %512 = vmatmul.mubr.bf16.gmra.mxu1 %v310_v48  ;;  %1183 = vmatprep.subr.bf16.mxu1 %v1237_v45  ;;  %v1529_v48 = vld [vmem:[#allocation6 + $0x18] sm:$0xff]  }
 0x117   :  { %v240_v56 = vadd.f32 %v239_v53, %v1490_v54  ;;  %v290_v57 = vmax.f32 %v238_v51, 0.0  ;;  %1127 = vmatpush3.bf16.msra.mxu0 %v1232_v42 }
 0x118   :  { %v243_v58 = vpop.f32.mrf.mxu0  ;;  %1128 = vmatprep.subr.bf16.mxu0 %v1233_v43 }
 0x119   :  { %v291_v60 = vmax.f32 %v240_v56, 0.0  ;;  %v312_v0 = vpack.c.bf16 %v290_v57, %v288_v61  ;;  %v244_v4 = vadd.f32 %v243_v58, %v1492_v55  ;;  %1191 = vmatpush3.bf16.msra.mxu1 %v1237_v45 }
 0x11a   :  { %v245_v62 = vpop.f32.mrf.mxu0  ;;  %1184 = vmatprep.subr.bf16.mxu1 %v1238_v46 }
 0x11b   :  { %v313_v63 = vpack.c.bf16 %v291_v60, %v289_v59  ;;  %v246_v2 = vadd.f32 %v245_v62, %v1490_v54  ;;  %v292_v11 = vmax.f32 %v244_v4, 0.0  ;;  %1129 = vmatpush3.bf16.msra.mxu0 %v1233_v43 }
 0x11c   :  { %v247_v1 = vpop.f32.mrf.mxu0 }
 0x11d   :  { %v248_v3 = vadd.f32 %v247_v1, %v1492_v55  ;;  %519 = vmatprep.mubr.bf16.mxu1 %v313_v63  ;;  %v293_v9 = vmax.f32 %v246_v2, 0.0  ;;  %1192 = vmatpush3.bf16.msra.mxu1 %v1238_v46 }
 0x11e   :  { %v249_v5 = vpop.f32.mrf.mxu0  ;;  %520 = vmatmul.mubr.bf16.gmra.mxu1 %v312_v0  ;;  %1185 = vmatprep.subr.bf16.mxu1 %v1526_v47 }
 0x11f   :  { %v250_v6 = vadd.f32 %v249_v5, %v1490_v54  ;;  %v294_v7 = vmax.f32 %v248_v3, 0.0 }
 0x120   :  { %v253_v8 = vpop.f32.mrf.mxu0 }
 0x121   :  { %v295_v10 = vmax.f32 %v250_v6, 0.0  ;;  %v314_v14 = vpack.c.bf16 %v294_v7, %v292_v11  ;;  %v254_v18 = vadd.f32 %v253_v8, %v1492_v55  ;;  %1193 = vmatpush3.bf16.msra.mxu1 %v1526_v47 }
 0x122   :  { %v255_v12 = vpop.f32.mrf.mxu0  ;;  %1186 = vmatprep.subr.bf16.mxu1 %v1529_v48 }
 0x123   :  { %v315_v13 = vpack.c.bf16 %v295_v10, %v293_v9  ;;  %v256_v16 = vadd.f32 %v255_v12, %v1490_v54  ;;  %v296_v25 = vmax.f32 %v254_v18, 0.0 }
 0x124   :  { %v257_v15 = vpop.f32.mrf.mxu0 }
 0x125   :  { %v258_v17 = vadd.f32 %v257_v15, %v1492_v55  ;;  %527 = vmatprep.mubr.bf16.mxu1 %v315_v13  ;;  %v297_v23 = vmax.f32 %v256_v16, 0.0  ;;  %1194 = vmatpush3.bf16.msra.mxu1 %v1529_v48 }
 0x126   :  { %v259_v19 = vpop.f32.mrf.mxu0  ;;  %528 = vmatmul.mubr.bf16.gmra.mxu1 %v314_v14 }
 0x127   :  { %v260_v20 = vadd.f32 %v259_v19, %v1490_v54  ;;  %v298_v21 = vmax.f32 %v258_v17, 0.0 }
 0x128   :  { %v263_v22 = vpop.f32.mrf.mxu0 }
 0x129   :  { %v299_v24 = vmax.f32 %v260_v20, 0.0  ;;  %v316_v28 = vpack.c.bf16 %v298_v21, %v296_v25  ;;  %v264_v32 = vadd.f32 %v263_v22, %v1492_v55 }
 0x12a   :  { %v265_v26 = vpop.f32.mrf.mxu0 }
 0x12b   :  { %v317_v27 = vpack.c.bf16 %v299_v24, %v297_v23  ;;  %v266_v30 = vadd.f32 %v265_v26, %v1490_v54  ;;  %v300_v38 = vmax.f32 %v264_v32, 0.0 }
 0x12c   :  { %v267_v29 = vpop.f32.mrf.mxu0 }
 0x12d   :  { %v268_v31 = vadd.f32 %v267_v29, %v1492_v55  ;;  %535 = vmatprep.mubr.bf16.mxu1 %v317_v27  ;;  %v301_v36 = vmax.f32 %v266_v30, 0.0  ;;  %v1234_v55 = vld [vmem:[#allocation4 + $0x8] sm:$0xff]  }
 0x12e   :  { %v269_v33 = vpop.f32.mrf.mxu0  ;;  %536 = vmatmul.mubr.bf16.gmra.mxu1 %v316_v28  ;;  %1130 = vmatprep.subr.bf16.mxu0 %v1234_v55 }
 0x12f   :  { %v270_v34 = vadd.f32 %v269_v33, %v1490_v54  ;;  %v302_v35 = vmax.f32 %v268_v31, 0.0  ;;  %1131 = vmatpush3.bf16.msra.mxu0 %v1234_v55  ;;  %v1235_v54 = vld [vmem:[#allocation4] sm:$0xff]  }
 0x130   :  { %1132 = vmatprep.subr.bf16.mxu0 %v1235_v54 }
 0x131   :  { %v303_v37 = vmax.f32 %v270_v34, 0.0  ;;  %v318_v40 = vpack.c.bf16 %v302_v35, %v300_v38 }
 0x133   :  { %v319_v39 = vpack.c.bf16 %v303_v37, %v301_v36  ;;  %1133 = vmatpush3.bf16.msra.mxu0 %v1235_v54 }
 0x134   :  { %1150 = vmatprep.subr.bf16.mxu0 %v1236_v44 }
 0x135   :  { %543 = vmatprep.mubr.bf16.mxu1 %v319_v39 }
 0x136   :  { %544 = vmatmul.mubr.bf16.gmra.mxu1 %v318_v40 }
 0x1be   :  { %v1038_v49 = vpop.f32.mrf.mxu1 }
 0x1c0   :  { %v1039_v50 = vpop.f32.mrf.mxu1 }
 0x1c1   :  { %v1040_v51 = vadd.f32 %v1039_v50, %v1038_v49 }
 0x1c2   :  { %v1041_v53 = vpop.f32.mrf.mxu1 }
 0x1c3   :  { %v490_v57 = vadd.f32 %v1040_v51, %v1537_v52 }
 0x1c4   :  { %v1042_v56 = vpop.f32.mrf.mxu1 }
 0x1c5   :  { %v1043_v58 = vadd.f32 %v1042_v56, %v1041_v53  ;;  %v552_v62 = vmax.f32 %v490_v57, 0.0 }
 0x1c6   :  { %v1044_v59 = vpop.f32.mrf.mxu1 }
 0x1c7   :  { %v493_v60 = vadd.f32 %v1043_v58, %v1537_v52 }
 0x1c8   :  { %v1045_v61 = vpop.f32.mrf.mxu1 }
 0x1c9   :  { %v553_v63 = vmax.f32 %v493_v60, 0.0  ;;  %v1046_v0 = vadd.f32 %v1045_v61, %v1044_v59 }
 0x1ca   :  { %v1047_v1 = vpop.f32.mrf.mxu1 }
 0x1cb   :  { %v568_v2 = vpack.c.bf16 %v553_v63, %v552_v62  ;;  %v498_v4 = vadd.f32 %v1046_v0, %v1537_v52 }
 0x1cc   :  { %v1048_v3 = vpop.f32.mrf.mxu1 }
 0x1cd   :  { %v1049_v5 = vadd.f32 %v1048_v3, %v1047_v1  ;;  %1134 = vmatprep.mubr.bf16.mxu0 %v568_v2  ;;  %v554_v9 = vmax.f32 %v498_v4, 0.0 }
 0x1ce   :  { %v1050_v6 = vpop.f32.mrf.mxu1 }
 0x1cf   :  { %v501_v7 = vadd.f32 %v1049_v5, %v1537_v52 }
 0x1d0   :  { %v1051_v8 = vpop.f32.mrf.mxu1 }
 0x1d1   :  { %v555_v10 = vmax.f32 %v501_v7, 0.0  ;;  %v1052_v11 = vadd.f32 %v1051_v8, %v1050_v6 }
 0x1d2   :  { %v1053_v12 = vpop.f32.mrf.mxu1 }
 0x1d3   :  { %v569_v13 = vpack.c.bf16 %v555_v10, %v554_v9  ;;  %v506_v15 = vadd.f32 %v1052_v11, %v1537_v52 }
 0x1d4   :  { %v1054_v14 = vpop.f32.mrf.mxu1 }
 0x1d5   :  { %v1055_v16 = vadd.f32 %v1054_v14, %v1053_v12  ;;  %1135 = vmatmul.mubr.bf16.vlgmr.msra.gmra.mxu0 %v569_v13  ;;  %v556_v20 = vmax.f32 %v506_v15, 0.0  ;;  %v1241_v13 = vld [vmem:[#allocation6 + $0x10] sm:$0xff]   ;;  %v1242_v14 = vld [vmem:[#allocation6 + $0x8] sm:$0xff]   ;;  %v1243_v15 = vld [vmem:[#allocation6] sm:$0xff]  }
 0x1d6   :  { %v1056_v17 = vpop.f32.mrf.mxu1  ;;  %1151 = vmatpush3.bf16.msra.mxu0 %v1236_v44  ;;  %1187 = vmatprep.subr.bf16.mxu1 %v1241_v13 }
 0x1d7   :  { %v509_v18 = vadd.f32 %v1055_v16, %v1537_v52  ;;  %1152 = vmatprep.subr.bf16.mxu0 %v1237_v45  ;;  %1195 = vmatpush3.bf16.msra.mxu1 %v1241_v13 }
 0x1d8   :  { %v1057_v19 = vpop.f32.mrf.mxu1  ;;  %1188 = vmatprep.subr.bf16.mxu1 %v1242_v14 }
 0x1d9   :  { %v557_v21 = vmax.f32 %v509_v18, 0.0  ;;  %v1058_v22 = vadd.f32 %v1057_v19, %v1056_v17  ;;  %v1004_v17 = vld [vmem:[%s1635_s6] ss:$0 sm:$0xff] }
 0x1da   :  { %v1059_v23 = vpop.f32.mrf.mxu1  ;;  %1153 = vmatpush3.bf16.msra.mxu0 %v1237_v45 }
 0x1db   :  { %v570_v24 = vpack.c.bf16 %v557_v21, %v556_v20  ;;  %1154 = vmatprep.subr.bf16.mxu0 %v1238_v46  ;;  %v514_v26 = vadd.f32 %v1058_v22, %v1537_v52  ;;  %1196 = vmatpush3.bf16.msra.mxu1 %v1242_v14 }
 0x1dc   :  { %v1060_v25 = vpop.f32.mrf.mxu1  ;;  %1189 = vmatprep.subr.bf16.mxu1 %v1243_v15 }
 0x1dd   :  { %v1061_v27 = vadd.f32 %v1060_v25, %v1059_v23  ;;  %1138 = vmatprep.mubr.bf16.mxu0 %v570_v24  ;;  %v558_v31 = vmax.f32 %v514_v26, 0.0 }
 0x1de   :  { %v1062_v28 = vpop.f32.mrf.mxu1  ;;  %1155 = vmatpush3.bf16.msra.mxu0 %v1238_v46 }
 0x1df   :  { %v517_v29 = vadd.f32 %v1061_v27, %v1537_v52  ;;  %1156 = vmatprep.subr.bf16.mxu0 %v1526_v47  ;;  %1197 = vmatpush3.bf16.msra.mxu1 %v1243_v15 }
 0x1e0   :  { %v1063_v30 = vpop.f32.mrf.mxu1 }
 0x1e1   :  { %v559_v32 = vmax.f32 %v517_v29, 0.0  ;;  %v1064_v33 = vadd.f32 %v1063_v30, %v1062_v28 }
 0x1e2   :  { %v1065_v34 = vpop.f32.mrf.mxu1  ;;  %1157 = vmatpush3.bf16.msra.mxu0 %v1526_v47 }
 0x1e3   :  { %v571_v35 = vpack.c.bf16 %v559_v32, %v558_v31  ;;  %1158 = vmatprep.subr.bf16.mxu0 %v1529_v48  ;;  %v522_v37 = vadd.f32 %v1064_v33, %v1537_v52 }
 0x1e4   :  { %v1066_v36 = vpop.f32.mrf.mxu1 }
 0x1e5   :  { %v1067_v38 = vadd.f32 %v1066_v36, %v1065_v34  ;;  %1139 = vmatmul.mubr.bf16.gmra.mxu0 %v571_v35  ;;  %v560_v42 = vmax.f32 %v522_v37, 0.0 }
 0x1e6   :  { %v1068_v39 = vpop.f32.mrf.mxu1  ;;  %1159 = vmatpush3.bf16.msra.mxu0 %v1529_v48 }
 0x1e7   :  { %v525_v40 = vadd.f32 %v1067_v38, %v1537_v52  ;;  %1160 = vmatprep.subr.bf16.mxu0 %v1241_v13 }
 0x1e8   :  { %v1069_v41 = vpop.f32.mrf.mxu1 }
 0x1e9   :  { %v561_v43 = vmax.f32 %v525_v40, 0.0  ;;  %v1070_v55 = vadd.f32 %v1069_v41, %v1068_v39 }
 0x1ea   :  { %v1071_v54 = vpop.f32.mrf.mxu1  ;;  %1161 = vmatpush3.bf16.msra.mxu0 %v1241_v13 }
 0x1eb   :  { %v572_v44 = vpack.c.bf16 %v561_v43, %v560_v42  ;;  %v530_v46 = vadd.f32 %v1070_v55, %v1537_v52  ;;  %1162 = vmatprep.subr.bf16.mxu0 %v1242_v14 }
 0x1ec   :  { %v1072_v45 = vpop.f32.mrf.mxu1 }
 0x1ed   :  { %v1073_v47 = vadd.f32 %v1072_v45, %v1071_v54  ;;  %1142 = vmatprep.mubr.bf16.mxu0 %v572_v44  ;;  %v562_v53 = vmax.f32 %v530_v46, 0.0 }
 0x1ee   :  { %v1074_v49 = vpop.f32.mrf.mxu1  ;;  %1163 = vmatpush3.bf16.msra.mxu0 %v1242_v14 }
 0x1ef   :  { %v533_v50 = vadd.f32 %v1073_v47, %v1537_v52  ;;  %1164 = vmatprep.subr.bf16.mxu0 %v1243_v15 }
 0x1f0   :  { %v1075_v51 = vpop.f32.mrf.mxu1 }
 0x1f1   :  { %v563_v56 = vmax.f32 %v533_v50, 0.0  ;;  %v1076_v48 = vadd.f32 %v1075_v51, %v1074_v49 }
 0x1f2   :  { %v1077_v57 = vpop.f32.mrf.mxu1  ;;  %1165 = vmatpush3.bf16.msra.mxu0 %v1243_v15 }
 0x1f3   :  { %v573_v58 = vpack.c.bf16 %v563_v56, %v562_v53  ;;  %v538_v60 = vadd.f32 %v1076_v48, %v1537_v52 }
 0x1f4   :  { %v1078_v59 = vpop.f32.mrf.mxu1 }
 0x1f5   :  { %v1079_v61 = vadd.f32 %v1078_v59, %v1077_v57  ;;  %1143 = vmatmul.mubr.bf16.gmra.mxu0 %v573_v58  ;;  %v564_v1 = vmax.f32 %v538_v60, 0.0 }
 0x1f6   :  { %v1080_v62 = vpop.f32.mrf.mxu1 }
 0x1f7   :  { %v541_v63 = vadd.f32 %v1079_v61, %v1537_v52 }
 0x1f8   :  { %v1081_v0 = vpop.f32.mrf.mxu1 }
 0x1f9   :  { %v565_v2 = vmax.f32 %v541_v63, 0.0  ;;  %v1082_v3 = vadd.f32 %v1081_v0, %v1080_v62 }
 0x1fa   :  { %v1083_v4 = vpop.f32.mrf.mxu1 }
 0x1fb   :  { %v574_v5 = vpack.c.bf16 %v565_v2, %v564_v1  ;;  %v546_v7 = vadd.f32 %v1082_v3, %v1537_v52 }
 0x1fc   :  { %v1084_v6 = vpop.f32.mrf.mxu1 }
 0x1fd   :  { %v1085_v8 = vadd.f32 %v1084_v6, %v1083_v4  ;;  %1146 = vmatprep.mubr.bf16.mxu0 %v574_v5  ;;  %v566_v10 = vmax.f32 %v546_v7, 0.0 }
 0x1ff   :  { %v549_v9 = vadd.f32 %v1085_v8, %v1537_v52 }
 0x201   :  { %v567_v11 = vmax.f32 %v549_v9, 0.0  ;;  %v1021_v9 = vld [vmem:[%s1637_s8] ss:$0 sm:$0xff] }
 0x203   :  { %v575_v12 = vpack.c.bf16 %v567_v11, %v566_v10 }
 0x205   :  { %1147 = vmatmul.mubr.bf16.gmra.mxu0 %v575_v12 }
 0x295   :  { %v1136_v52 = vpop.f32.mrf.mxu0 }
 0x296   :  { %v690_v21 = vadd.f32 %v1136_v52, %v1004_v17 }
 0x297   :  { %v681_v16 = vpop.f32.mrf.mxu0 }
 0x298   :  { %v682_v19 = vadd.f32 %v1004_v17, %v681_v16  ;;  %v746_v27 = vmax.f32 %v690_v21, 0.0 }
 0x299   :  { %v1137_v18 = vpop.f32.mrf.mxu0 }
 0x29a   :  { %v693_v20 = vadd.f32 %v1137_v18, %v1004_v17  ;;  %v744_v25 = vmax.f32 %v682_v19, 0.0 }
 0x29b   :  { %v684_v22 = vpop.f32.mrf.mxu0 }
 0x29c   :  { %v685_v23 = vadd.f32 %v1004_v17, %v684_v22  ;;  %v747_v24 = vmax.f32 %v693_v20, 0.0 }
 0x29e   :  { %v745_v26 = vmax.f32 %v685_v23, 0.0  ;;  %v761_v29 = vpack.c.bf16 %v747_v24, %v746_v27 }
 0x2a0   :  { %v760_v28 = vpack.c.bf16 %v745_v26, %v744_v25 }
 0x2a2   :  { %1166 = vmatprep.mubr.bf16.mxu0 %v760_v28 }
 0x2a3   :  { %1167 = vmatmul.mubr.bf16.vlgmr.msra.gmra.mxu0 %v761_v29 }
 0x2a5   :  { %v1140_v30 = vpop.f32.mrf.mxu0 }
 0x2a6   :  { %v706_v35 = vadd.f32 %v1140_v30, %v1004_v17 }
 0x2a7   :  { %v697_v31 = vpop.f32.mrf.mxu0 }
 0x2a8   :  { %v698_v33 = vadd.f32 %v1004_v17, %v697_v31  ;;  %v750_v41 = vmax.f32 %v706_v35, 0.0 }
 0x2a9   :  { %v1141_v32 = vpop.f32.mrf.mxu0 }
 0x2aa   :  { %v709_v34 = vadd.f32 %v1141_v32, %v1004_v17  ;;  %v748_v39 = vmax.f32 %v698_v33, 0.0 }
 0x2ab   :  { %v700_v36 = vpop.f32.mrf.mxu0 }
 0x2ac   :  { %v701_v37 = vadd.f32 %v1004_v17, %v700_v36  ;;  %v751_v38 = vmax.f32 %v709_v34, 0.0 }
 0x2ae   :  { %v749_v40 = vmax.f32 %v701_v37, 0.0  ;;  %v763_v43 = vpack.c.bf16 %v751_v38, %v750_v41 }
 0x2b0   :  { %v762_v42 = vpack.c.bf16 %v749_v40, %v748_v39 }
 0x2b2   :  { %1170 = vmatprep.mubr.bf16.mxu1 %v762_v42 }
 0x2b3   :  { %1171 = vmatmul.mubr.bf16.vlgmr.msra.gmra.mxu1 %v763_v43 }
 0x2b5   :  { %v1144_v55 = vpop.f32.mrf.mxu0 }
 0x2b6   :  { %v722_v47 = vadd.f32 %v1144_v55, %v1004_v17 }
 0x2b7   :  { %v713_v54 = vpop.f32.mrf.mxu0 }
 0x2b8   :  { %v714_v45 = vadd.f32 %v1004_v17, %v713_v54  ;;  %v754_v48 = vmax.f32 %v722_v47, 0.0 }
 0x2b9   :  { %v1145_v44 = vpop.f32.mrf.mxu0 }
 0x2ba   :  { %v725_v46 = vadd.f32 %v1145_v44, %v1004_v17  ;;  %v752_v53 = vmax.f32 %v714_v45, 0.0 }
 0x2bb   :  { %v716_v49 = vpop.f32.mrf.mxu0 }
 0x2bc   :  { %v717_v50 = vadd.f32 %v1004_v17, %v716_v49  ;;  %v755_v51 = vmax.f32 %v725_v46, 0.0 }
 0x2be   :  { %v753_v56 = vmax.f32 %v717_v50, 0.0  ;;  %v765_v58 = vpack.c.bf16 %v755_v51, %v754_v48 }
 0x2c0   :  { %v764_v57 = vpack.c.bf16 %v753_v56, %v752_v53 }
 0x2c2   :  { %1174 = vmatprep.mubr.bf16.mxu1 %v764_v57 }
 0x2c3   :  { %1175 = vmatmul.mubr.bf16.gmra.mxu1 %v765_v58 }
 0x2c5   :  { %v1148_v59 = vpop.f32.mrf.mxu0 }
 0x2c6   :  { %v738_v0 = vadd.f32 %v1148_v59, %v1004_v17 }
 0x2c7   :  { %v729_v60 = vpop.f32.mrf.mxu0 }
 0x2c8   :  { %v730_v62 = vadd.f32 %v1004_v17, %v729_v60  ;;  %v758_v6 = vmax.f32 %v738_v0, 0.0 }
 0x2c9   :  { %v1149_v61 = vpop.f32.mrf.mxu0 }
 0x2ca   :  { %v741_v63 = vadd.f32 %v1149_v61, %v1004_v17  ;;  %v756_v4 = vmax.f32 %v730_v62, 0.0 }
 0x2cb   :  { %v732_v1 = vpop.f32.mrf.mxu0 }
 0x2cc   :  { %v733_v2 = vadd.f32 %v1004_v17, %v732_v1  ;;  %v759_v3 = vmax.f32 %v741_v63, 0.0 }
 0x2ce   :  { %v757_v5 = vmax.f32 %v733_v2, 0.0  ;;  %v767_v8 = vpack.c.bf16 %v759_v3, %v758_v6 }
 0x2d0   :  { %v766_v7 = vpack.c.bf16 %v757_v5, %v756_v4 }
 0x2d2   :  { %1178 = vmatprep.mubr.bf16.mxu1 %v766_v7 }
 0x2d3   :  { %1179 = vmatmul.mubr.bf16.gmra.mxu1 %v767_v8 }
 0x363   :  { %v1168_v10 = vpop.f32.mrf.mxu0 }
 0x364   :  { %v938_v11 = vadd.f32 %v1168_v10, %v1021_v9 }
 0x365   :  { %v866_v12 = vpop.f32.mrf.mxu0 }
 0x366   :  { %955 = vst.msk [vmem:[%s1638_s9 + $0x10] sm:$0xff] %vm952_vm1, %v938_v11  ;;  %v936_v13 = vadd.f32 %v1021_v9, %v866_v12 }
 0x367   :  { %v1169_v14 = vpop.f32.mrf.mxu0 }
 0x368   :  { %953 = vst.msk [vmem:[%s1638_s9] sm:$0xff] %vm952_vm1, %v936_v13  ;;  %v939_v15 = vadd.f32 %v1169_v14, %v1021_v9 }
 0x369   :  { %v869_v52 = vpop.f32.mrf.mxu0 }
 0x36a   :  { %956 = vst.msk [vmem:[%s1638_s9 + $0x18] sm:$0xff] %vm952_vm1, %v939_v15  ;;  %v937_v16 = vadd.f32 %v1021_v9, %v869_v52 }
 0x36c   :  { %954 = vst.msk [vmem:[%s1638_s9 + $0x8] sm:$0xff] %vm952_vm1, %v937_v16 }
 0x373   :  { %v1172_v17 = vpop.f32.mrf.mxu1 }
 0x374   :  { %v942_v18 = vadd.f32 %v1172_v17, %v1021_v9 }
 0x375   :  { %v882_v19 = vpop.f32.mrf.mxu1 }
 0x376   :  { %959 = vst.msk [vmem:[%s1638_s9 + $0x30] sm:$0xff] %vm952_vm1, %v942_v18  ;;  %v940_v20 = vadd.f32 %v1021_v9, %v882_v19 }
 0x377   :  { %v1173_v21 = vpop.f32.mrf.mxu1 }
 0x378   :  { %957 = vst.msk [vmem:[%s1638_s9 + $0x20] sm:$0xff] %vm952_vm1, %v940_v20  ;;  %v943_v22 = vadd.f32 %v1173_v21, %v1021_v9 }
 0x379   :  { %v885_v23 = vpop.f32.mrf.mxu1 }
 0x37a   :  { %960 = vst.msk [vmem:[%s1638_s9 + $0x38] sm:$0xff] %vm952_vm1, %v943_v22  ;;  %v941_v24 = vadd.f32 %v1021_v9, %v885_v23 }
 0x37c   :  { %958 = vst.msk [vmem:[%s1638_s9 + $0x28] sm:$0xff] %vm952_vm1, %v941_v24 }
 0x383   :  { %v1176_v25 = vpop.f32.mrf.mxu1 }
 0x384   :  { %v946_v26 = vadd.f32 %v1176_v25, %v1021_v9 }
 0x385   :  { %v898_v27 = vpop.f32.mrf.mxu1 }
 0x386   :  { %963 = vst.msk [vmem:[%s1638_s9 + $0x50] sm:$0xff] %vm952_vm1, %v946_v26  ;;  %v944_v28 = vadd.f32 %v1021_v9, %v898_v27 }
 0x387   :  { %v1177_v29 = vpop.f32.mrf.mxu1 }
 0x388   :  { %961 = vst.msk [vmem:[%s1638_s9 + $0x40] sm:$0xff] %vm952_vm1, %v944_v28  ;;  %v947_v30 = vadd.f32 %v1177_v29, %v1021_v9 }
 0x389   :  { %v901_v31 = vpop.f32.mrf.mxu1 }
 0x38a   :  { %964 = vst.msk [vmem:[%s1638_s9 + $0x58] sm:$0xff] %vm952_vm1, %v947_v30  ;;  %v945_v32 = vadd.f32 %v1021_v9, %v901_v31 }
 0x38c   :  { %962 = vst.msk [vmem:[%s1638_s9 + $0x48] sm:$0xff] %vm952_vm1, %v945_v32 }
 0x393   :  { %v1180_v33 = vpop.f32.mrf.mxu1 }
 0x394   :  { %v950_v34 = vadd.f32 %v1180_v33, %v1021_v9 }
 0x395   :  { %v914_v35 = vpop.f32.mrf.mxu1 }
 0x396   :  { %967 = vst.msk [vmem:[%s1638_s9 + $0x70] sm:$0xff] %vm952_vm1, %v950_v34  ;;  %v948_v36 = vadd.f32 %v1021_v9, %v914_v35 }
 0x397   :  { %v1181_v37 = vpop.f32.mrf.mxu1 }
 0x398   :  { %965 = vst.msk [vmem:[%s1638_s9 + $0x60] sm:$0xff] %vm952_vm1, %v948_v36  ;;  %v951_v38 = vadd.f32 %v1181_v37, %v1021_v9 }
 0x399   :  { %v917_v39 = vpop.f32.mrf.mxu1 }
 0x39a   :  { %968 = vst.msk [vmem:[%s1638_s9 + $0x78] sm:$0xff] %vm952_vm1, %v951_v38  ;;  %v949_v40 = vadd.f32 %v1021_v9, %v917_v39 }
 0x39c   :  { %966 = vst.msk [vmem:[%s1638_s9 + $0x68] sm:$0xff] %vm952_vm1, %v949_v40 }
 0x39d   :  { %973 = vsyncpa [#allocation3], 1 }
 0x39e   :  { %974 = vsyncpa [#allocation5], 1 }

</bundles_post_ra>
